<compile_context>
chip_gen: v7x
topology: tpu7x:2x2x1
jax: 0.10.0
libtpu: 0.0.40
codegen_flags: <defaults>
</compile_context>

<pallas_src>
import math
import jax
import jax.numpy as jnp
from jax.experimental import pallas as pl
from jax.experimental.pallas import tpu as pltpu


def _round_up(x, m):
    return ((x + m - 1) // m) * m


def _cdiv(a, b):
    return -(-a // b)


def _vmem_capacity_bytes():
    try:
        info = pltpu.get_tpu_info()
        cap = getattr(info, "vmem_capacity_bytes", None)
        if cap:
            return int(cap)
    except Exception:
        pass
    return 64 * 1024 * 1024  # conservative: v7x per-TensorCore VMEM


def _mlp_kernel(x_ref, w1_ref, b1_ref, w2_ref, b2_ref, w3_ref, b3_ref, o_ref):
    # Fused 3-layer MLP on one batch tile.
    # x arrives f32 from HBM and is cast to bf16 here (VPU cast overlaps MXU);
    # weights are bf16, all matmuls accumulate in f32, bias/ReLU stay f32.
    x = x_ref[...].astype(jnp.bfloat16)
    h1 = jnp.dot(x, w1_ref[...], preferred_element_type=jnp.float32) + b1_ref[...]
    h1 = jnp.maximum(h1, 0.0)
    h2 = jnp.dot(h1.astype(jnp.bfloat16), w2_ref[...],
                 preferred_element_type=jnp.float32) + b2_ref[...]
    h2 = jnp.maximum(h2, 0.0)
    out = jnp.dot(h2.astype(jnp.bfloat16), w3_ref[...],
                  preferred_element_type=jnp.float32) + b3_ref[...]
    o_ref[...] = out.astype(o_ref.dtype)  # only num_classes lanes written back


def prepare_params(params):
    """One-time (per model) pad + cast of the probe weights.

    Hidden dims are zero-padded to lane multiples (260->384, 64->128), which
    is numerically exact (zero cols/rows, zero bias pad, ReLU(0)=0).
    num_classes is left unpadded so the output writeback stays narrow.
    Weights stored bf16 (native MXU rate), biases f32.  Call once and reuse.
    """
    w1, b1 = params["w1"], params["b1"]
    w2, b2 = params["w2"], params["b2"]
    w3, b3 = params["w3"], params["b3"]
    h1, h2 = w1.shape[1], w2.shape[1]
    h1_pad = _round_up(h1, 128)   # 260 -> 384 (deliberately NOT 512)
    h2_pad = _round_up(h2, 128)   # 64  -> 128
    return {
        "w1": jnp.pad(w1, ((0, 0), (0, h1_pad - h1))).astype(jnp.bfloat16),
        "b1": jnp.pad(b1, (0, h1_pad - h1)).reshape(1, -1).astype(jnp.float32),
        "w2": jnp.pad(w2, ((0, h1_pad - h1), (0, h2_pad - h2))).astype(jnp.bfloat16),
        "b2": jnp.pad(b2, (0, h2_pad - h2)).reshape(1, -1).astype(jnp.float32),
        "w3": jnp.pad(w3, ((0, h2_pad - h2), (0, 0))).astype(jnp.bfloat16),
        "b3": b3.reshape(1, -1).astype(jnp.float32),
    }


def heartbeat_linear_probe(x, prepared, *, max_tile_b=2048):
    """x: (batch, input_dim) float array. prepared: output of prepare_params()."""
    w1, b1 = prepared["w1"], prepared["b1"]
    w2, b2 = prepared["w2"], prepared["b2"]
    w3, b3 = prepared["w3"], prepared["b3"]

    batch, input_dim = x.shape
    assert w1.shape[0] == input_dim, (w1.shape, input_dim)
    h1_pad, h2_pad = w1.shape[1], w2.shape[1]
    num_classes = w3.shape[1]

    x = x.astype(jnp.float32)  # no-op for f32 inputs; no padding pass over x

    # ---- VMEM budget -> batch tiling (minimize batch-padding waste) --------
    vmem_cap = _vmem_capacity_bytes()
    vmem_budget = max(int(vmem_cap * 0.6), 16 * 2**20)
    # Conservative sizing assumes double-buffered weights (the fallback path).
    weight_bytes = 2 * (
        (input_dim * h1_pad + h1_pad * h2_pad + h2_pad * num_classes) * 2
        + (h1_pad + h2_pad + num_classes) * 4)
    out_lanes = max(128, _round_up(num_classes, 128))  # VMEM lane padding
    per_row = (
        2 * input_dim * 4              # f32 x tile, double-buffered
        + input_dim * 2                # in-kernel bf16 cast of the x tile
        + (h1_pad + h2_pad) * (4 + 2)  # f32 intermediates + bf16 casts
        + 2 * out_lanes * 4            # out tile, double-buffered
    )
    tile_cap = (max(vmem_budget - weight_bytes, 8 * per_row) // per_row) // 8 * 8
    tile_cap = max(8, min(max_tile_b, tile_cap))

    if batch <= tile_cap:
        # Single full-batch tile: block dim == full array dim, no padding at all.
        tile_b, num_tiles, padded_batch = batch, 1, batch
    else:
        num_tiles = _cdiv(batch, tile_cap)
        tile_b = _round_up(_cdiv(batch, num_tiles), 8)
        padded_batch = num_tiles * tile_b  # wastes < 8 rows per tile

    x_p = x if padded_batch == batch else jnp.pad(
        x, ((0, padded_batch - batch), (0, 0)))

    vmem_limit = int(min(vmem_cap * 3 // 4, 100 * 2**20))

    flops = 2 * padded_batch * (
        input_dim * h1_pad + h1_pad * h2_pad + h2_pad * num_classes)
    bytes_accessed = (
        padded_batch * input_dim * 4                       # x (f32, read once)
        + (w1.size + w2.size + w3.size) * 2                # bf16 weights
        + (b1.size + b2.size + b3.size) * 4                # f32 biases
        + padded_batch * num_classes * 4                   # narrow f32 output
    )

    const = lambda i: (0, 0)  # weights/biases stay VMEM-resident across steps

    def _call(single_buffer_weights):
        def const_spec(shape):
            if single_buffer_weights:
                # Block never changes -> single buffer halves the resident
                # weight footprint (matters most on v7x's 64 MiB VMEM).
                return pl.BlockSpec(shape, const, pipeline_mode=pl.Buffered(1))
            return pl.BlockSpec(shape, const)

        return pl.pallas_call(
            _mlp_kernel,
            out_shape=jax.ShapeDtypeStruct((padded_batch, num_classes),
                                           jnp.float32),
            grid=(num_tiles,),
            in_specs=[
                pl.BlockSpec((tile_b, input_dim), lambda i: (i, 0)),  # x
                const_spec((input_dim, h1_pad)),                      # W1
                const_spec((1, h1_pad)),                              # b1
                const_spec((h1_pad, h2_pad)),                         # W2
                const_spec((1, h2_pad)),                              # b2
                const_spec((h2_pad, num_classes)),                    # W3
                const_spec((1, num_classes)),                         # b3
            ],
            out_specs=pl.BlockSpec((tile_b, num_classes), lambda i: (i, 0)),
            compiler_params=pltpu.CompilerParams(
                # Shards the batch axis across both TensorCores on v7x;
                # measured no-op on single-TC v5e/v6e.
                dimension_semantics=("parallel",),
                vmem_limit_bytes=vmem_limit,
            ),
            cost_estimate=pl.CostEstimate(
                flops=flops, transcendentals=0, bytes_accessed=bytes_accessed),
        )(x_p, w1, b1, w2, b2, w3, b3)

    try:
        out = _call(True)
    except Exception:
        # pl.Buffered(1) not supported by this JAX/Mosaic build -> default
        # double-buffering (correctness unchanged, slightly more VMEM).
        out = _call(False)

    return out[:batch]


def init_params(key, input_dim, num_classes=2):
    """Xavier-uniform init (matches nn.init.xavier_uniform_), zero biases."""
    dims = [(input_dim, 260), (260, 64), (64, num_classes)]
    params = {}
    for i, (fan_in, fan_out) in enumerate(dims, start=1):
        key, sub = jax.random.split(key)
        bound = math.sqrt(6.0 / (fan_in + fan_out))
        params[f"w{i}"] = jax.random.uniform(
            sub, (fan_in, fan_out), jnp.float32, minval=-bound, maxval=bound)
        params[f"b{i}"] = jnp.zeros((fan_out,), jnp.float32)
    return params


def reference_forward(x, params):
    """Plain-JAX f32 reference (eval-mode forward) for correctness checking."""
    h = jnp.maximum(x @ params["w1"] + params["b1"], 0.0)
    h = jnp.maximum(h @ params["w2"] + params["b2"], 0.0)
    return h @ params["w3"] + params["b3"]


if __name__ == "__main__":
    key = jax.random.PRNGKey(0)
    batch, input_dim, num_classes = 2, 32, 2

    k_x, k_p = jax.random.split(key)
    x = jax.random.normal(k_x, (batch, input_dim), jnp.float32)
    params = init_params(k_p, input_dim, num_classes=num_classes)

    prepared = prepare_params(params)  # hoisted: pad + bf16-cast once per model
    out = jax.block_until_ready(heartbeat_linear_probe(x, prepared))
    ref = reference_forward(x, params)

    assert out.shape == (batch, num_classes), out.shape
    # bf16 weights / in-kernel bf16 activation cast with f32 accumulation:
    # loosened tolerance vs the f32 reference.
    err = float(jnp.max(jnp.abs(out - ref)))
    assert jnp.allclose(out, ref, atol=3e-2, rtol=3e-2), f"max err {err}"
    assert jnp.array_equal(jnp.argmax(out, -1), jnp.argmax(ref, -1)), "class mismatch"

    print("KERNEL_OK")
</pallas_src>

<mosaic_0001>
module attributes {stable_mosaic.version = 11 : i64} {
  func.func @_mlp_kernel(%arg0: i32, %arg1: memref<2x32xf32, #tpu.memory_space<vmem>>, %arg2: memref<32x384xbf16, #tpu.memory_space<vmem>>, %arg3: memref<1x384xf32, #tpu.memory_space<vmem>>, %arg4: memref<384x128xbf16, #tpu.memory_space<vmem>>, %arg5: memref<1x128xf32, #tpu.memory_space<vmem>>, %arg6: memref<128x2xbf16, #tpu.memory_space<vmem>>, %arg7: memref<1x2xf32, #tpu.memory_space<vmem>>, %arg8: memref<2x2xf32, #tpu.memory_space<vmem>>) attributes {dimension_semantics = [#tpu.dimension_semantics<parallel>], iteration_bounds = array<i64: 1>, scalar_prefetch = 0 : i64, scratch_operands = 0 : i64, tpu.core_type = #tpu.core_type<tc>, window_params = [{transform_indices = @transform_0, window_bounds = array<i64: 2, 32>}, {pipeline_mode = #tpu.pipeline_mode<synchronous>, transform_indices = @transform_1, window_bounds = array<i64: 32, 384>}, {pipeline_mode = #tpu.pipeline_mode<synchronous>, transform_indices = @transform_2, window_bounds = array<i64: 1, 384>}, {pipeline_mode = #tpu.pipeline_mode<synchronous>, transform_indices = @transform_3, window_bounds = array<i64: 384, 128>}, {pipeline_mode = #tpu.pipeline_mode<synchronous>, transform_indices = @transform_4, window_bounds = array<i64: 1, 128>}, {pipeline_mode = #tpu.pipeline_mode<synchronous>, transform_indices = @transform_5, window_bounds = array<i64: 128, 2>}, {pipeline_mode = #tpu.pipeline_mode<synchronous>, transform_indices = @transform_6, window_bounds = array<i64: 1, 2>}, {transform_indices = @transform_7, window_bounds = array<i64: 2, 2>}]} {
    %c0 = arith.constant 0 : index
    %c0_0 = arith.constant 0 : index
    %0 = vector.load %arg1[%c0, %c0_0] : memref<2x32xf32, #tpu.memory_space<vmem>>, vector<2x32xf32>
    %1 = arith.truncf %0 : vector<2x32xf32> to vector<2x32xbf16>
    %c0_1 = arith.constant 0 : index
    %c0_2 = arith.constant 0 : index
    %2 = vector.load %arg2[%c0_1, %c0_2] : memref<32x384xbf16, #tpu.memory_space<vmem>>, vector<32x384xbf16>
    %cst = arith.constant dense<0.000000e+00> : vector<2x384xf32>
    %3 = tpu.matmul %1, %2, %cst {dimension_numbers = #tpu.dot_dimension_numbers<[1], [0], [0], [1], [0, 0, 1, 1], [], []>} : vector<2x32xbf16>, vector<32x384xbf16>, vector<2x384xf32> -> vector<2x384xf32>
    %c0_3 = arith.constant 0 : index
    %c0_4 = arith.constant 0 : index
    %4 = vector.load %arg3[%c0_3, %c0_4] : memref<1x384xf32, #tpu.memory_space<vmem>>, vector<1x384xf32>
    %5 = vector.broadcast %4 : vector<1x384xf32> to vector<2x384xf32>
    %6 = arith.addf %3, %5 : vector<2x384xf32>
    %cst_5 = arith.constant 0.000000e+00 : f32
    %7 = vector.broadcast %cst_5 : f32 to vector<2x384xf32>
    %8 = arith.maximumf %6, %7 : vector<2x384xf32>
    %9 = arith.truncf %8 : vector<2x384xf32> to vector<2x384xbf16>
    %c0_6 = arith.constant 0 : index
    %c0_7 = arith.constant 0 : index
    %10 = vector.load %arg4[%c0_6, %c0_7] : memref<384x128xbf16, #tpu.memory_space<vmem>>, vector<384x128xbf16>
    %cst_8 = arith.constant dense<0.000000e+00> : vector<2x128xf32>
    %11 = tpu.matmul %9, %10, %cst_8 {dimension_numbers = #tpu.dot_dimension_numbers<[1], [0], [0], [1], [0, 0, 1, 1], [], []>} : vector<2x384xbf16>, vector<384x128xbf16>, vector<2x128xf32> -> vector<2x128xf32>
    %c0_9 = arith.constant 0 : index
    %c0_10 = arith.constant 0 : index
    %12 = vector.load %arg5[%c0_9, %c0_10] : memref<1x128xf32, #tpu.memory_space<vmem>>, vector<1x128xf32>
    %13 = vector.broadcast %12 : vector<1x128xf32> to vector<2x128xf32>
    %14 = arith.addf %11, %13 : vector<2x128xf32>
    %cst_11 = arith.constant 0.000000e+00 : f32
    %15 = vector.broadcast %cst_11 : f32 to vector<2x128xf32>
    %16 = arith.maximumf %14, %15 : vector<2x128xf32>
    %17 = arith.truncf %16 : vector<2x128xf32> to vector<2x128xbf16>
    %c0_12 = arith.constant 0 : index
    %c0_13 = arith.constant 0 : index
    %18 = vector.load %arg6[%c0_12, %c0_13] : memref<128x2xbf16, #tpu.memory_space<vmem>>, vector<128x2xbf16>
    %cst_14 = arith.constant dense<0.000000e+00> : vector<2x2xf32>
    %19 = tpu.matmul %17, %18, %cst_14 {dimension_numbers = #tpu.dot_dimension_numbers<[1], [0], [0], [1], [0, 0, 1, 1], [], []>} : vector<2x128xbf16>, vector<128x2xbf16>, vector<2x2xf32> -> vector<2x2xf32>
    %c0_15 = arith.constant 0 : index
    %c0_16 = arith.constant 0 : index
    %20 = vector.load %arg7[%c0_15, %c0_16] : memref<1x2xf32, #tpu.memory_space<vmem>>, vector<1x2xf32>
    %21 = vector.broadcast %20 : vector<1x2xf32> to vector<2x2xf32>
    %22 = arith.addf %19, %21 : vector<2x2xf32>
    %c0_17 = arith.constant 0 : index
    %c0_18 = arith.constant 0 : index
    %23 = vector.load %arg8[%c0_17, %c0_18] : memref<2x2xf32, #tpu.memory_space<vmem>>, vector<2x2xf32>
    tpu.vector_store %arg8[%c0_17, %c0_18], %22 {strides = array<i32>} : memref<2x2xf32, #tpu.memory_space<vmem>>, vector<2x2xf32>,
    return
  }
  func.func @transform_0(%arg0: i32) -> (i32, i32) {
    %c0_i32 = arith.constant 0 : i32
    %c0_i32_0 = arith.constant 0 : i32
    return %arg0, %c0_i32 : i32, i32
  }
  func.func @transform_1(%arg0: i32) -> (i32, i32) {
    %c0_i32 = arith.constant 0 : i32
    %c0_i32_0 = arith.constant 0 : i32
    %c0_i32_1 = arith.constant 0 : i32
    return %c0_i32, %c0_i32_0 : i32, i32
  }
  func.func @transform_2(%arg0: i32) -> (i32, i32) {
    %c0_i32 = arith.constant 0 : i32
    %c0_i32_0 = arith.constant 0 : i32
    %c0_i32_1 = arith.constant 0 : i32
    return %c0_i32, %c0_i32_0 : i32, i32
  }
  func.func @transform_3(%arg0: i32) -> (i32, i32) {
    %c0_i32 = arith.constant 0 : i32
    %c0_i32_0 = arith.constant 0 : i32
    %c0_i32_1 = arith.constant 0 : i32
    return %c0_i32, %c0_i32_0 : i32, i32
  }
  func.func @transform_4(%arg0: i32) -> (i32, i32) {
    %c0_i32 = arith.constant 0 : i32
    %c0_i32_0 = arith.constant 0 : i32
    %c0_i32_1 = arith.constant 0 : i32
    return %c0_i32, %c0_i32_0 : i32, i32
  }
  func.func @transform_5(%arg0: i32) -> (i32, i32) {
    %c0_i32 = arith.constant 0 : i32
    %c0_i32_0 = arith.constant 0 : i32
    %c0_i32_1 = arith.constant 0 : i32
    return %c0_i32, %c0_i32_0 : i32, i32
  }
  func.func @transform_6(%arg0: i32) -> (i32, i32) {
    %c0_i32 = arith.constant 0 : i32
    %c0_i32_0 = arith.constant 0 : i32
    %c0_i32_1 = arith.constant 0 : i32
    return %c0_i32, %c0_i32_0 : i32, i32
  }
  func.func @transform_7(%arg0: i32) -> (i32, i32) {
    %c0_i32 = arith.constant 0 : i32
    %c0_i32_0 = arith.constant 0 : i32
    return %arg0, %c0_i32 : i32, i32
  }
}

module attributes {stable_mosaic.version = 11 : i64} {
  func.func @_mlp_kernel(%arg0: i32, %arg1: memref<2x32xf32, #tpu.memory_space<vmem>>, %arg2: memref<32x384xbf16, #tpu.memory_space<vmem>>, %arg3: memref<1x384xf32, #tpu.memory_space<vmem>>, %arg4: memref<384x128xbf16, #tpu.memory_space<vmem>>, %arg5: memref<1x128xf32, #tpu.memory_space<vmem>>, %arg6: memref<128x2xbf16, #tpu.memory_space<vmem>>, %arg7: memref<1x2xf32, #tpu.memory_space<vmem>>, %arg8: memref<2x2xf32, #tpu.memory_space<vmem>>) attributes {dimension_semantics = [#tpu.dimension_semantics<parallel>], iteration_bounds = array<i64: 1>, scalar_prefetch = 0 : i64, scratch_operands = 0 : i64, tpu.core_type = #tpu.core_type<tc>, window_params = [{transform_indices = @transform_0, window_bounds = array<i64: 2, 32>}, {pipeline_mode = #tpu.pipeline_mode<synchronous>, transform_indices = @transform_1, window_bounds = array<i64: 32, 384>}, {pipeline_mode = #tpu.pipeline_mode<synchronous>, transform_indices = @transform_2, window_bounds = array<i64: 1, 384>}, {pipeline_mode = #tpu.pipeline_mode<synchronous>, transform_indices = @transform_3, window_bounds = array<i64: 384, 128>}, {pipeline_mode = #tpu.pipeline_mode<synchronous>, transform_indices = @transform_4, window_bounds = array<i64: 1, 128>}, {pipeline_mode = #tpu.pipeline_mode<synchronous>, transform_indices = @transform_5, window_bounds = array<i64: 128, 2>}, {pipeline_mode = #tpu.pipeline_mode<synchronous>, transform_indices = @transform_6, window_bounds = array<i64: 1, 2>}, {transform_indices = @transform_7, window_bounds = array<i64: 2, 2>}]} {
    %c0 = arith.constant 0 : index
    %c0_0 = arith.constant 0 : index
    %0 = vector.load %arg1[%c0, %c0_0] : memref<2x32xf32, #tpu.memory_space<vmem>>, vector<2x32xf32>
    %1 = arith.truncf %0 : vector<2x32xf32> to vector<2x32xbf16>
    %c0_1 = arith.constant 0 : index
    %c0_2 = arith.constant 0 : index
    %2 = vector.load %arg2[%c0_1, %c0_2] : memref<32x384xbf16, #tpu.memory_space<vmem>>, vector<32x384xbf16>
    %cst = arith.constant dense<0.000000e+00> : vector<2x384xf32>
    %3 = tpu.matmul %1, %2, %cst {dimension_numbers = #tpu.dot_dimension_numbers<[1], [0], [0], [1], [0, 0, 1, 1], [], []>} : vector<2x32xbf16>, vector<32x384xbf16>, vector<2x384xf32> -> vector<2x384xf32>
    %c0_3 = arith.constant 0 : index
    %c0_4 = arith.constant 0 : index
    %4 = vector.load %arg3[%c0_3, %c0_4] : memref<1x384xf32, #tpu.memory_space<vmem>>, vector<1x384xf32>
    %5 = vector.broadcast %4 : vector<1x384xf32> to vector<2x384xf32>
    %6 = arith.addf %3, %5 : vector<2x384xf32>
    %cst_5 = arith.constant 0.000000e+00 : f32
    %7 = vector.broadcast %cst_5 : f32 to vector<2x384xf32>
    %8 = arith.maximumf %6, %7 : vector<2x384xf32>
    %9 = arith.truncf %8 : vector<2x384xf32> to vector<2x384xbf16>
    %c0_6 = arith.constant 0 : index
    %c0_7 = arith.constant 0 : index
    %10 = vector.load %arg4[%c0_6, %c0_7] : memref<384x128xbf16, #tpu.memory_space<vmem>>, vector<384x128xbf16>
    %cst_8 = arith.constant dense<0.000000e+00> : vector<2x128xf32>
    %11 = tpu.matmul %9, %10, %cst_8 {dimension_numbers = #tpu.dot_dimension_numbers<[1], [0], [0], [1], [0, 0, 1, 1], [], []>} : vector<2x384xbf16>, vector<384x128xbf16>, vector<2x128xf32> -> vector<2x128xf32>
    %c0_9 = arith.constant 0 : index
    %c0_10 = arith.constant 0 : index
    %12 = vector.load %arg5[%c0_9, %c0_10] : memref<1x128xf32, #tpu.memory_space<vmem>>, vector<1x128xf32>
    %13 = vector.broadcast %12 : vector<1x128xf32> to vector<2x128xf32>
    %14 = arith.addf %11, %13 : vector<2x128xf32>
    %cst_11 = arith.constant 0.000000e+00 : f32
    %15 = vector.broadcast %cst_11 : f32 to vector<2x128xf32>
    %16 = arith.maximumf %14, %15 : vector<2x128xf32>
    %17 = arith.truncf %16 : vector<2x128xf32> to vector<2x128xbf16>
    %c0_12 = arith.constant 0 : index
    %c0_13 = arith.constant 0 : index
    %18 = vector.load %arg6[%c0_12, %c0_13] : memref<128x2xbf16, #tpu.memory_space<vmem>>, vector<128x2xbf16>
    %cst_14 = arith.constant dense<0.000000e+00> : vector<2x2xf32>
    %19 = tpu.matmul %17, %18, %cst_14 {dimension_numbers = #tpu.dot_dimension_numbers<[1], [0], [0], [1], [0, 0, 1, 1], [], []>} : vector<2x128xbf16>, vector<128x2xbf16>, vector<2x2xf32> -> vector<2x2xf32>
    %c0_15 = arith.constant 0 : index
    %c0_16 = arith.constant 0 : index
    %20 = vector.load %arg7[%c0_15, %c0_16] : memref<1x2xf32, #tpu.memory_space<vmem>>, vector<1x2xf32>
    %21 = vector.broadcast %20 : vector<1x2xf32> to vector<2x2xf32>
    %22 = arith.addf %19, %21 : vector<2x2xf32>
    %c0_17 = arith.constant 0 : index
    %c0_18 = arith.constant 0 : index
    %23 = vector.load %arg8[%c0_17, %c0_18] : memref<2x2xf32, #tpu.memory_space<vmem>>, vector<2x2xf32>
    tpu.vector_store %arg8[%c0_17, %c0_18], %22 {strides = array<i32>} : memref<2x2xf32, #tpu.memory_space<vmem>>, vector<2x2xf32>,
    return
  }
  func.func @transform_0(%arg0: i32) -> (i32, i32) {
    %c0_i32 = arith.constant 0 : i32
    %c0_i32_0 = arith.constant 0 : i32
    return %arg0, %c0_i32 : i32, i32
  }
  func.func @transform_1(%arg0: i32) -> (i32, i32) {
    %c0_i32 = arith.constant 0 : i32
    %c0_i32_0 = arith.constant 0 : i32
    %c0_i32_1 = arith.constant 0 : i32
    return %c0_i32, %c0_i32_0 : i32, i32
  }
  func.func @transform_2(%arg0: i32) -> (i32, i32) {
    %c0_i32 = arith.constant 0 : i32
    %c0_i32_0 = arith.constant 0 : i32
    %c0_i32_1 = arith.constant 0 : i32
    return %c0_i32, %c0_i32_0 : i32, i32
  }
  func.func @transform_3(%arg0: i32) -> (i32, i32) {
    %c0_i32 = arith.constant 0 : i32
    %c0_i32_0 = arith.constant 0 : i32
    %c0_i32_1 = arith.constant 0 : i32
    return %c0_i32, %c0_i32_0 : i32, i32
  }
  func.func @transform_4(%arg0: i32) -> (i32, i32) {
    %c0_i32 = arith.constant 0 : i32
    %c0_i32_0 = arith.constant 0 : i32
    %c0_i32_1 = arith.constant 0 : i32
    return %c0_i32, %c0_i32_0 : i32, i32
  }
  func.func @transform_5(%arg0: i32) -> (i32, i32) {
    %c0_i32 = arith.constant 0 : i32
    %c0_i32_0 = arith.constant 0 : i32
    %c0_i32_1 = arith.constant 0 : i32
    return %c0_i32, %c0_i32_0 : i32, i32
  }
  func.func @transform_6(%arg0: i32) -> (i32, i32) {
    %c0_i32 = arith.constant 0 : i32
    %c0_i32_0 = arith.constant 0 : i32
    %c0_i32_1 = arith.constant 0 : i32
    return %c0_i32, %c0_i32_0 : i32, i32
  }
  func.func @transform_7(%arg0: i32) -> (i32, i32) {
    %c0_i32 = arith.constant 0 : i32
    %c0_i32_0 = arith.constant 0 : i32
    return %arg0, %c0_i32 : i32, i32
  }
}

</mosaic_0001>

<bundles_post_ra>
// kernel: tpu_custom_call.1
= control target key start
LH: loop header
LB: loop body
LE: loop exit
PB: predicated region body
PF: predicated region fallthrough
CT: control target
= control target key end

     0   :  { %12 = vsyncpa [#allocation3], 0  ;;  %s980_s0 = inlined_call_operand.vmem [shape: f32[2,32], index: 0, kind: input, shape index: {}]   ;;  %s981_s1 = inlined_call_operand.vmem [shape: bf16[32,384], index: 1, kind: input, shape index: {}]   ;;  %s982_s2 = inlined_call_operand.vmem [shape: f32[1,384], index: 2, kind: input, shape index: {}]   ;;  %s983_s3 = inlined_call_operand.hbm [shape: bf16[384,128], index: 3, kind: input, shape index: {}]   ;;  %s984_s4 = inlined_call_operand.vmem [shape: f32[1,128], index: 4, kind: input, shape index: {}]   ;;  %s985_s5 = inlined_call_operand.vmem [shape: bf16[128,2], index: 5, kind: input, shape index: {}]   ;;  %s986_s6 = inlined_call_operand.vmem [shape: f32[1,2], index: 6, kind: input, shape index: {}]   ;;  %s987_s7 = inlined_call_operand.hbm [shape: f32[2,2], index: 7, kind: output, shape index: {}]  }
   0x1   :  { %13 = vsyncpa [#allocation4], 0  ;;  %s829_s24 = smov [#allocation2]   ;;  %s781_s28 = scalar_lea.hbm %s983_s3, 3072 }
   0x2   :  { %s25_s25 = sshll.u32 %s829_s24, 4  ;;  %p782_p0 = scmp.ne.s32.totalorder %s983_s3, %s781_s28  ;;  %s26_s25 = int_to_ptr.vmem [resolvable:$true] %s25_s25 }
   0x3   :  { %p785_p1 = scmp.lt.u32.totalorder %s781_s28, %s983_s3 }
   0x5   :  { %p787_p2 = pnand %p785_p1, %p782_p0 }
   0x7   :  { %790 = shalt.err (!%p787_p2)
}
   0x8   :  { %s791_s10 = scalar_lea.vmem %s26_s25, 3072  ;;  %p796_p4 = scmp.lt.s32.totalorder %s26_s25, %s26_s25 }
   0x9   :  { %p792_p3 = scmp.ne.s32.totalorder %s26_s25, %s791_s10  ;;  %p797_p5 = scmp.lt.s32.totalorder %s791_s10, %s791_s10 }
   0xb   :  { %p798_p6 = por %p797_p5, %p796_p4 }
   0xd   :  { %p799_p7 = pnand %p798_p6, %p792_p3 }
   0xf   :  { %802 = shalt.err (!%p799_p7)
}
  0x10   :  { %s830_s11 = smov 64   ;;  %s831_s12 = smov 4  }
  0x11   :  { %31 = dma.hbm_to_vmem [thread:$0]  %s983_s3, 3072, %s26_s25, [#allocation3], %s830_s11, %s830_s11, %s831_s12  }
  0x12   :  { %825 = dma.done.wait [#allocation3], 3072  }
  0x13   :  { %826 = vsyncadd [#allocation3], 4294964224  ;;  %v832_v0 = vmov 0   ;;  %v741_v1 = vld [vmem:[%s981_s1 + $0x4] ss:$12 sps:$4 sm:$0xff]   ;;  %vm101_vm0 = vcmask 261120   ;;  %v54_v34 = vlaneseq }
  0x14   :  { %137 = vmatprep.mubr.bf16.mxu1 %v832_v0  ;;  %v743_v2 = vld [vmem:[%s981_s1] ss:$12 sps:$4 sm:$0xff]   ;;  %105 = vmatprep.subr.bf16.mxu1 %v741_v1  ;;  %v744_v3 = vld [vmem:[%s981_s1 + $0x1c] ss:$12 sps:$4 sm:$0xff]   ;;  %v746_v4 = vld [vmem:[%s981_s1 + $0x18] ss:$12 sps:$4 sm:$0xff]  }
  0x15   :  { %106 = vmatpush1.bf16.msra.mxu1 %v743_v2  ;;  %v42_v5 = vld [vmem:[%s980_s0] sm:$0x3]  ;;  %v747_v6 = vld [vmem:[%s981_s1 + $0x8] ss:$12 sps:$4 sm:$0xff]   ;;  %v833_v11 = vmov 0.0   ;;  %vm834_vm1 = vmmov 0  }
  0x16   :  { %107 = vmatprep.subr.bf16.mxu1 %v744_v3  ;;  %v749_v7 = vld [vmem:[#allocation2 + $0x40] sm:$0xff]   ;;  %v43_v8 = vpack.c.bf16 %v42_v5, %v42_v5  ;;  %v751_v10 = vld [vmem:[#allocation2 + $0x48] sm:$0xff]   ;;  %v754_v13 = vld [vmem:[#allocation2 + $0x50] sm:$0xff]   ;;  %v55_v35 = vshrl.u32 %v54_v34, 7  ;;  %s835_s3 = smov [#allocation5]   ;;  %vm584_vm2 = vcmask 9216  }
  0x17   :  { %v750_v9 = vld [vmem:[#allocation2] sm:$0xff]   ;;  %646 = vmatprep.subr.bf16.mxu0 %v749_v7  ;;  %v752_v12 = vld [vmem:[#allocation2 + $0x8] sm:$0xff]   ;;  %v755_v15 = vld [vmem:[#allocation2 + $0x10] sm:$0xff]   ;;  %s592_s23 = sshll.u32 %s835_s3, 4  ;;  %s593_s23 = int_to_ptr.vmem [resolvable:$true] %s592_s23 }
  0x18   :  { %647 = vmatpush3.bf16.msra.mxu0 %v750_v9  ;;  %v748_v14 = vld [vmem:[%s981_s1 + $0x20] ss:$12 sps:$4 sm:$0xff]   ;;  %v757_v16 = vld [vmem:[#allocation2 + $0x58] sm:$0xff]   ;;  %v759_v22 = vld [vmem:[#allocation2 + $0x90] sm:$0xff]   ;;  %v56_v36 = vsub.s32 0, %v55_v35  ;;  %v60_v38 = vsub.s32 1, %v55_v35  ;;  %p808_p9 = scmp.lt.s32.totalorder %s593_s23, %s593_s23 }
  0x19   :  { %108 = vmatpush1.bf16.msra.mxu1 %v746_v4  ;;  %648 = vmatprep.subr.bf16.mxu0 %v751_v10  ;;  %v753_v17 = vld [vmem:[#allocation2 + $0x80] sm:$0xff]   ;;  %v758_v18 = vld [vmem:[#allocation2 + $0x18] sm:$0xff]   ;;  %v756_v20 = vld [vmem:[#allocation2 + $0x88] sm:$0xff]   ;;  %v64_v44 = vsub.s32 2, %v55_v35 }
  0x1a   :  { %686 = vmatprep.subr.bf16.mxu1 %v833_v11  ;;  %v760_v19 = vld [vmem:[#allocation2 + $0x60] sm:$0xff]   ;;  %v763_v23 = vld [vmem:[#allocation2 + $0x68] sm:$0xff]   ;;  %v762_v25 = vld [vmem:[#allocation2 + $0x98] sm:$0xff]  }
  0x1b   :  { %v761_v21 = vld [vmem:[#allocation2 + $0x20] sm:$0xff]   ;;  %v764_v24 = vld [vmem:[#allocation2 + $0x28] sm:$0xff]   ;;  %v766_v27 = vld [vmem:[#allocation2 + $0x70] sm:$0xff]  }
  0x1c   :  { %607 = vmatmul.mubr.msk.bf16.vlgmr.msra.gmra.mrb[0].mxu1 %vm101_vm0, %v43_v8  ;;  %649 = vmatpush3.bf16.msra.mxu0 %v752_v12  ;;  %v765_v26 = vld [vmem:[#allocation2 + $0xa0] sm:$0xff]   ;;  %v767_v28 = vld [vmem:[#allocation2 + $0x30] sm:$0xff]   ;;  %v768_v29 = vld [vmem:[#allocation2 + $0xa8] sm:$0xff]  }
  0x1d   :  { %687 = vmatpush3.bf16.msra.mxu1 %v747_v6  ;;  %690 = vmatprep.mubr.msk.bf16.mxu1 %vm834_vm1, %v833_v11  ;;  %v769_v30 = vld [vmem:[#allocation2 + $0x78] sm:$0xff]   ;;  %v771_v32 = vld [vmem:[#allocation2 + $0xb0] sm:$0xff]   ;;  %v52_v37 = vld [vmem:[%s982_s2] sm:$0x7] }
  0x1e   :  { %688 = vmatprep.subr.bf16.mxu1 %v833_v11  ;;  %650 = vmatprep.subr.bf16.mxu0 %v754_v13  ;;  %v770_v31 = vld [vmem:[#allocation2 + $0x38] sm:$0xff]   ;;  %v57_v39 = vrot.slane %v52_v37, %v56_v36  ;;  %v61_v40 = vrot.slane %v52_v37, %v60_v38  ;;  %v65_v50 = vrot.slane %v52_v37, %v64_v44  ;;  %v773_v52 = vld [vmem:[%s985_s5] sm:$0xff]   ;;  %v774_v58 = vld [vmem:[%s985_s5 + $0x8] sm:$0xff]  }
  0x1f   :  { %v772_v33 = vld [vmem:[#allocation2 + $0xb8] sm:$0xff]   ;;  %v775_v62 = vld [vmem:[%s985_s5 + $0x10] sm:$0xff]   ;;  %v777_v0 = vld [vmem:[%s985_s5 + $0x20] sm:$0xff]  }
  0x20   :  { %651 = vmatpush3.bf16.msra.mxu0 %v755_v15  ;;  %v776_v63 = vld [vmem:[%s985_s5 + $0x18] sm:$0xff]   ;;  %v778_v1 = vld [vmem:[%s985_s5 + $0x28] sm:$0xff]   ;;  %v779_v2 = vld [vmem:[%s985_s5 + $0x30] sm:$0xff]  }
  0x21   :  { %689 = vmatpush3.bf16.msra.mxu1 %v748_v14  ;;  %652 = vmatprep.subr.bf16.mxu0 %v757_v16  ;;  %v780_v3 = vld [vmem:[%s985_s5 + $0x38] sm:$0xff]   ;;  %v609_v6 = vld [vmem:[%s984_s4] ss:$0 sm:$0xff]  ;;  %s803_s4 = scalar_lea.vmem %s593_s23, 32 }
  0x22   :  { %694 = vmatprep.subr.bf16.mxu1 %v833_v11  ;;  %p804_p8 = scmp.ne.s32.totalorder %s593_s23, %s803_s4  ;;  %p809_p10 = scmp.lt.s32.totalorder %s803_s4, %s803_s4 }
  0x24   :  { %691 = vmatmul.mubr.msk.bf16.vlgmr.msra.gmra.mrb[4].mxu1 %vm101_vm0, %v43_v8  ;;  %653 = vmatpush3.bf16.msra.mxu0 %v758_v18  ;;  %v634_v18 = vld [vmem:[%s986_s6] ss:$0 sm:$0xff]  ;;  %p810_p11 = por %p809_p10, %p808_p9 }
  0x25   :  { %695 = vmatpush3.bf16.msra.mxu1 %v753_v17  ;;  %710 = vmatprep.mubr.msk.bf16.mxu1 %vm834_vm1, %v833_v11 }
  0x26   :  { %696 = vmatprep.subr.bf16.mxu1 %v833_v11  ;;  %654 = vmatprep.subr.bf16.mxu0 %v760_v19  ;;  %p811_p12 = pnand %p810_p11, %p804_p8 }
  0x28   :  { %655 = vmatpush3.bf16.msra.mxu0 %v761_v21 }
  0x29   :  { %697 = vmatpush3.bf16.msra.mxu1 %v756_v20  ;;  %656 = vmatprep.subr.bf16.mxu0 %v763_v23 }
  0x2a   :  { %698 = vmatprep.subr.bf16.mxu1 %v833_v11 }
  0x2c   :  { %657 = vmatpush3.bf16.msra.mxu0 %v764_v24 }
  0x2d   :  { %699 = vmatpush3.bf16.msra.mxu1 %v759_v22  ;;  %658 = vmatprep.subr.bf16.mxu0 %v766_v27 }
  0x2e   :  { %700 = vmatprep.subr.bf16.mxu1 %v833_v11 }
  0x30   :  { %659 = vmatpush3.bf16.msra.mxu0 %v767_v28 }
  0x31   :  { %701 = vmatpush3.bf16.msra.mxu1 %v762_v25  ;;  %660 = vmatprep.subr.bf16.mxu0 %v769_v30 }
  0x32   :  { %702 = vmatprep.subr.bf16.mxu1 %v833_v11 }
  0x34   :  { %661 = vmatpush3.bf16.msra.mxu0 %v770_v31 }
  0x35   :  { %703 = vmatpush3.bf16.msra.mxu1 %v765_v26  ;;  %714 = vmatprep.subr.bf16.mxu0 %v833_v11 }
  0x36   :  { %704 = vmatprep.subr.bf16.mxu1 %v833_v11 }
  0x39   :  { %705 = vmatpush3.bf16.msra.mxu1 %v768_v29 }
  0x3a   :  { %706 = vmatprep.subr.bf16.mxu1 %v833_v11 }
  0x3d   :  { %707 = vmatpush3.bf16.msra.mxu1 %v771_v32 }
  0x3e   :  { %708 = vmatprep.subr.bf16.mxu1 %v833_v11 }
  0x41   :  { %709 = vmatpush3.bf16.msra.mxu1 %v772_v33 }
  0xef   :  { %v139_v41 = vpop.f32.mrb[0].mxu1 }
  0xf0   :  { %v140_v42 = vadd.f32 %v139_v41, %v57_v39  ;;  %v141_v43 = vpop.f32.mrb[1].mxu1 }
  0xf1   :  { %v142_v45 = vadd.f32 %v141_v43, %v61_v40  ;;  %v143_v46 = vpop.f32.mrb[2].mxu1 }
  0xf2   :  { %v186_v47 = vmax.f32 %v140_v42, 0.0  ;;  %v144_v48 = vpop.f32.mrb[3].mxu1 }
  0xf3   :  { %v187_v49 = vmax.f32 %v142_v45, 0.0 }
  0xf4   :  { %v189_v53 = vpack.c.bf16 %v186_v47, %v186_v47 }
  0xf5   :  { %v190_v51 = vpack.c.bf16 %v187_v49, %v187_v49 }
  0xf7   :  { %v180_v54 = vpop.f32.mrb[4].mxu1  ;;  %423 = vmatprep.mubr.bf16.mxu0 %v190_v51 }
  0xf8   :  { %v181_v55 = vadd.f32 %v180_v54, %v65_v50  ;;  %v692_v56 = vpop.f32.mrb[5].mxu1  ;;  %424 = vmatmul.mubr.bf16.vlgmr.msra.gmra.mrb[0].mxu0 %v189_v53 }
  0xf9   :  { %v183_v57 = vpop.f32.mrb[6].mxu1  ;;  %715 = vmatpush3.bf16.msra.mxu0 %v773_v52  ;;  %730 = vmatprep.mubr.msk.bf16.mxu0 %vm834_vm1, %v833_v11 }
  0xfa   :  { %v188_v59 = vmax.f32 %v181_v55, 0.0  ;;  %v693_v60 = vpop.f32.mrb[7].mxu1  ;;  %716 = vmatprep.subr.bf16.mxu0 %v833_v11 }
  0xfc   :  { %v191_v61 = vpack.c.bf16 %v188_v59, %v188_v59 }
  0xfd   :  { %717 = vmatpush3.bf16.msra.mxu0 %v774_v58 }
  0xfe   :  { %711 = vmatmul.mubr.bf16.vlgmr.msra.gmra.mrb[8].mxu1 %v191_v61  ;;  %718 = vmatprep.subr.bf16.mxu0 %v833_v11 }
 0x101   :  { %719 = vmatpush3.bf16.msra.mxu0 %v775_v62 }
 0x102   :  { %720 = vmatprep.subr.bf16.mxu0 %v833_v11 }
 0x105   :  { %721 = vmatpush3.bf16.msra.mxu0 %v776_v63 }
 0x106   :  { %722 = vmatprep.subr.bf16.mxu0 %v833_v11 }
 0x109   :  { %723 = vmatpush3.bf16.msra.mxu0 %v777_v0 }
 0x10a   :  { %724 = vmatprep.subr.bf16.mxu0 %v833_v11 }
 0x10d   :  { %725 = vmatpush3.bf16.msra.mxu0 %v778_v1 }
 0x10e   :  { %726 = vmatprep.subr.bf16.mxu0 %v833_v11 }
 0x111   :  { %727 = vmatpush3.bf16.msra.mxu0 %v779_v2 }
 0x112   :  { %728 = vmatprep.subr.bf16.mxu0 %v833_v11 }
 0x115   :  { %729 = vmatpush3.bf16.msra.mxu0 %v780_v3 }
 0x1cb   :  { %v662_v4 = vpop.f32.mrb[0].mxu0 }
 0x1cc   :  { %v663_v5 = vpop.f32.mrb[1].mxu0 }
 0x1cd   :  { %v664_v7 = vadd.f32 %v663_v5, %v662_v4  ;;  %v665_v8 = vpop.f32.mrb[2].mxu0 }
 0x1ce   :  { %v666_v9 = vpop.f32.mrb[3].mxu0 }
 0x1cf   :  { %v426_v10 = vadd.f32 %v664_v7, %v609_v6 }
 0x1d1   :  { %v465_v12 = vpop.f32.mrb[8].mxu1 }
 0x1d2   :  { %v466_v13 = vadd.f32 %v465_v12, %v426_v10  ;;  %v712_v14 = vpop.f32.mrb[9].mxu1 }
 0x1d3   :  { %v468_v15 = vpop.f32.mrb[10].mxu1 }
 0x1d4   :  { %v471_v11 = vmax.f32 %v466_v13, 0.0  ;;  %v713_v16 = vpop.f32.mrb[11].mxu1 }
 0x1d6   :  { %v472_v17 = vpack.c.bf16 %v471_v11, %v471_v11 }
 0x1d8   :  { %731 = vmatmul.mubr.bf16.vlgmr.msra.gmra.mrb[4].mxu0 %v472_v17 }
 0x2ab   :  { %v578_v19 = vpop.f32.mrb[4].mxu0 }
 0x2ac   :  { %v579_v20 = vadd.f32 %v634_v18, %v578_v19  ;;  %v732_v21 = vpop.f32.mrb[5].mxu0 }
 0x2ad   :  { %v581_v22 = vpop.f32.mrb[6].mxu0 }
 0x2ae   :  { %v733_v23 = vpop.f32.mrb[7].mxu0  ;;  %585 = vst.msk [vmem:[#allocation5] sm:$0x3] %vm584_vm2, %v579_v20 }
 0x2af   :  { %814 = shalt.err (!%p811_p12)
}
 0x2b0   :  { %s815_s6 = scalar_lea.hbm %s987_s7, 32 }
 0x2b1   :  { %p816_p13 = scmp.ne.s32.totalorder %s987_s7, %s815_s6  ;;  %p819_p0 = scmp.lt.u32.totalorder %s815_s6, %s987_s7 }
 0x2b3   :  { %p821_p1 = pnand %p819_p0, %p816_p13 }
 0x2b5   :  { %824 = shalt.err (!%p821_p1)
}
 0x2b6   :  { %595 = dma.vmem_to_hbm [thread:$0]  %s593_s23, 32, %s987_s7, [#allocation4]  }
 0x2b7   :  { %827 = dma.done.wait [#allocation4], 32  }
 0x2b8   :  { %828 = vsyncadd [#allocation4], 4294967264 }
 0x2b9   :  { %599 = vsyncpa [#allocation3], 1 }
 0x2ba   :  { %600 = vsyncpa [#allocation4], 1 }

// kernel: tpu_custom_call.1
= control target key start
LH: loop header
LB: loop body
LE: loop exit
PB: predicated region body
PF: predicated region fallthrough
CT: control target
= control target key end

     0   :  { %12 = vsyncpa [#allocation3], 0  ;;  %s980_s0 = inlined_call_operand.vmem [shape: f32[2,32], index: 0, kind: input, shape index: {}]   ;;  %s981_s1 = inlined_call_operand.vmem [shape: bf16[32,384], index: 1, kind: input, shape index: {}]   ;;  %s982_s2 = inlined_call_operand.vmem [shape: f32[1,384], index: 2, kind: input, shape index: {}]   ;;  %s983_s3 = inlined_call_operand.hbm [shape: bf16[384,128], index: 3, kind: input, shape index: {}]   ;;  %s984_s4 = inlined_call_operand.vmem [shape: f32[1,128], index: 4, kind: input, shape index: {}]   ;;  %s985_s5 = inlined_call_operand.vmem [shape: bf16[128,2], index: 5, kind: input, shape index: {}]   ;;  %s986_s6 = inlined_call_operand.vmem [shape: f32[1,2], index: 6, kind: input, shape index: {}]   ;;  %s987_s7 = inlined_call_operand.hbm [shape: f32[2,2], index: 7, kind: output, shape index: {}]  }
   0x1   :  { %13 = vsyncpa [#allocation4], 0  ;;  %s829_s24 = smov [#allocation2]   ;;  %s781_s28 = scalar_lea.hbm %s983_s3, 3072 }
   0x2   :  { %s25_s25 = sshll.u32 %s829_s24, 4  ;;  %p782_p0 = scmp.ne.s32.totalorder %s983_s3, %s781_s28  ;;  %s26_s25 = int_to_ptr.vmem [resolvable:$true] %s25_s25 }
   0x3   :  { %p785_p1 = scmp.lt.u32.totalorder %s781_s28, %s983_s3 }
   0x5   :  { %p787_p2 = pnand %p785_p1, %p782_p0 }
   0x7   :  { %790 = shalt.err (!%p787_p2)
}
   0x8   :  { %s791_s10 = scalar_lea.vmem %s26_s25, 3072  ;;  %p796_p4 = scmp.lt.s32.totalorder %s26_s25, %s26_s25 }
   0x9   :  { %p792_p3 = scmp.ne.s32.totalorder %s26_s25, %s791_s10  ;;  %p797_p5 = scmp.lt.s32.totalorder %s791_s10, %s791_s10 }
   0xb   :  { %p798_p6 = por %p797_p5, %p796_p4 }
   0xd   :  { %p799_p7 = pnand %p798_p6, %p792_p3 }
   0xf   :  { %802 = shalt.err (!%p799_p7)
}
  0x10   :  { %s830_s11 = smov 64   ;;  %s831_s12 = smov 4  }
  0x11   :  { %31 = dma.hbm_to_vmem [thread:$0]  %s983_s3, 3072, %s26_s25, [#allocation3], %s830_s11, %s830_s11, %s831_s12  }
  0x12   :  { %825 = dma.done.wait [#allocation3], 3072  }
  0x13   :  { %826 = vsyncadd [#allocation3], 4294964224  ;;  %v832_v0 = vmov 0   ;;  %v741_v1 = vld [vmem:[%s981_s1 + $0x4] ss:$12 sps:$4 sm:$0xff]   ;;  %vm101_vm0 = vcmask 261120   ;;  %v54_v34 = vlaneseq }
  0x14   :  { %137 = vmatprep.mubr.bf16.mxu1 %v832_v0  ;;  %v743_v2 = vld [vmem:[%s981_s1] ss:$12 sps:$4 sm:$0xff]   ;;  %105 = vmatprep.subr.bf16.mxu1 %v741_v1  ;;  %v744_v3 = vld [vmem:[%s981_s1 + $0x1c] ss:$12 sps:$4 sm:$0xff]   ;;  %v746_v4 = vld [vmem:[%s981_s1 + $0x18] ss:$12 sps:$4 sm:$0xff]  }
  0x15   :  { %106 = vmatpush1.bf16.msra.mxu1 %v743_v2  ;;  %v42_v5 = vld [vmem:[%s980_s0] sm:$0x3]  ;;  %v747_v6 = vld [vmem:[%s981_s1 + $0x8] ss:$12 sps:$4 sm:$0xff]   ;;  %v833_v11 = vmov 0.0   ;;  %vm834_vm1 = vmmov 0  }
  0x16   :  { %107 = vmatprep.subr.bf16.mxu1 %v744_v3  ;;  %v749_v7 = vld [vmem:[#allocation2 + $0x40] sm:$0xff]   ;;  %v43_v8 = vpack.c.bf16 %v42_v5, %v42_v5  ;;  %v751_v10 = vld [vmem:[#allocation2 + $0x48] sm:$0xff]   ;;  %v754_v13 = vld [vmem:[#allocation2 + $0x50] sm:$0xff]   ;;  %v55_v35 = vshrl.u32 %v54_v34, 7  ;;  %s835_s3 = smov [#allocation5]   ;;  %vm584_vm2 = vcmask 9216  }
  0x17   :  { %v750_v9 = vld [vmem:[#allocation2] sm:$0xff]   ;;  %646 = vmatprep.subr.bf16.mxu0 %v749_v7  ;;  %v752_v12 = vld [vmem:[#allocation2 + $0x8] sm:$0xff]   ;;  %v755_v15 = vld [vmem:[#allocation2 + $0x10] sm:$0xff]   ;;  %s592_s23 = sshll.u32 %s835_s3, 4  ;;  %s593_s23 = int_to_ptr.vmem [resolvable:$true] %s592_s23 }
  0x18   :  { %647 = vmatpush3.bf16.msra.mxu0 %v750_v9  ;;  %v748_v14 = vld [vmem:[%s981_s1 + $0x20] ss:$12 sps:$4 sm:$0xff]   ;;  %v757_v16 = vld [vmem:[#allocation2 + $0x58] sm:$0xff]   ;;  %v759_v22 = vld [vmem:[#allocation2 + $0x90] sm:$0xff]   ;;  %v56_v36 = vsub.s32 0, %v55_v35  ;;  %v60_v38 = vsub.s32 1, %v55_v35  ;;  %p808_p9 = scmp.lt.s32.totalorder %s593_s23, %s593_s23 }
  0x19   :  { %108 = vmatpush1.bf16.msra.mxu1 %v746_v4  ;;  %648 = vmatprep.subr.bf16.mxu0 %v751_v10  ;;  %v753_v17 = vld [vmem:[#allocation2 + $0x80] sm:$0xff]   ;;  %v758_v18 = vld [vmem:[#allocation2 + $0x18] sm:$0xff]   ;;  %v756_v20 = vld [vmem:[#allocation2 + $0x88] sm:$0xff]   ;;  %v64_v44 = vsub.s32 2, %v55_v35 }
  0x1a   :  { %686 = vmatprep.subr.bf16.mxu1 %v833_v11  ;;  %v760_v19 = vld [vmem:[#allocation2 + $0x60] sm:$0xff]   ;;  %v763_v23 = vld [vmem:[#allocation2 + $0x68] sm:$0xff]   ;;  %v762_v25 = vld [vmem:[#allocation2 + $0x98] sm:$0xff]  }
  0x1b   :  { %v761_v21 = vld [vmem:[#allocation2 + $0x20] sm:$0xff]   ;;  %v764_v24 = vld [vmem:[#allocation2 + $0x28] sm:$0xff]   ;;  %v766_v27 = vld [vmem:[#allocation2 + $0x70] sm:$0xff]  }
  0x1c   :  { %607 = vmatmul.mubr.msk.bf16.vlgmr.msra.gmra.mrb[0].mxu1 %vm101_vm0, %v43_v8  ;;  %649 = vmatpush3.bf16.msra.mxu0 %v752_v12  ;;  %v765_v26 = vld [vmem:[#allocation2 + $0xa0] sm:$0xff]   ;;  %v767_v28 = vld [vmem:[#allocation2 + $0x30] sm:$0xff]   ;;  %v768_v29 = vld [vmem:[#allocation2 + $0xa8] sm:$0xff]  }
  0x1d   :  { %687 = vmatpush3.bf16.msra.mxu1 %v747_v6  ;;  %690 = vmatprep.mubr.msk.bf16.mxu1 %vm834_vm1, %v833_v11  ;;  %v769_v30 = vld [vmem:[#allocation2 + $0x78] sm:$0xff]   ;;  %v771_v32 = vld [vmem:[#allocation2 + $0xb0] sm:$0xff]   ;;  %v52_v37 = vld [vmem:[%s982_s2] sm:$0x7] }
  0x1e   :  { %688 = vmatprep.subr.bf16.mxu1 %v833_v11  ;;  %650 = vmatprep.subr.bf16.mxu0 %v754_v13  ;;  %v770_v31 = vld [vmem:[#allocation2 + $0x38] sm:$0xff]   ;;  %v57_v39 = vrot.slane %v52_v37, %v56_v36  ;;  %v61_v40 = vrot.slane %v52_v37, %v60_v38  ;;  %v65_v50 = vrot.slane %v52_v37, %v64_v44  ;;  %v773_v52 = vld [vmem:[%s985_s5] sm:$0xff]   ;;  %v774_v58 = vld [vmem:[%s985_s5 + $0x8] sm:$0xff]  }
  0x1f   :  { %v772_v33 = vld [vmem:[#allocation2 + $0xb8] sm:$0xff]   ;;  %v775_v62 = vld [vmem:[%s985_s5 + $0x10] sm:$0xff]   ;;  %v777_v0 = vld [vmem:[%s985_s5 + $0x20] sm:$0xff]  }
  0x20   :  { %651 = vmatpush3.bf16.msra.mxu0 %v755_v15  ;;  %v776_v63 = vld [vmem:[%s985_s5 + $0x18] sm:$0xff]   ;;  %v778_v1 = vld [vmem:[%s985_s5 + $0x28] sm:$0xff]   ;;  %v779_v2 = vld [vmem:[%s985_s5 + $0x30] sm:$0xff]  }
  0x21   :  { %689 = vmatpush3.bf16.msra.mxu1 %v748_v14  ;;  %652 = vmatprep.subr.bf16.mxu0 %v757_v16  ;;  %v780_v3 = vld [vmem:[%s985_s5 + $0x38] sm:$0xff]   ;;  %v609_v6 = vld [vmem:[%s984_s4] ss:$0 sm:$0xff]  ;;  %s803_s4 = scalar_lea.vmem %s593_s23, 32 }
  0x22   :  { %694 = vmatprep.subr.bf16.mxu1 %v833_v11  ;;  %p804_p8 = scmp.ne.s32.totalorder %s593_s23, %s803_s4  ;;  %p809_p10 = scmp.lt.s32.totalorder %s803_s4, %s803_s4 }
  0x24   :  { %691 = vmatmul.mubr.msk.bf16.vlgmr.msra.gmra.mrb[4].mxu1 %vm101_vm0, %v43_v8  ;;  %653 = vmatpush3.bf16.msra.mxu0 %v758_v18  ;;  %v634_v18 = vld [vmem:[%s986_s6] ss:$0 sm:$0xff]  ;;  %p810_p11 = por %p809_p10, %p808_p9 }
  0x25   :  { %695 = vmatpush3.bf16.msra.mxu1 %v753_v17  ;;  %710 = vmatprep.mubr.msk.bf16.mxu1 %vm834_vm1, %v833_v11 }
  0x26   :  { %696 = vmatprep.subr.bf16.mxu1 %v833_v11  ;;  %654 = vmatprep.subr.bf16.mxu0 %v760_v19  ;;  %p811_p12 = pnand %p810_p11, %p804_p8 }
  0x28   :  { %655 = vmatpush3.bf16.msra.mxu0 %v761_v21 }
  0x29   :  { %697 = vmatpush3.bf16.msra.mxu1 %v756_v20  ;;  %656 = vmatprep.subr.bf16.mxu0 %v763_v23 }
  0x2a   :  { %698 = vmatprep.subr.bf16.mxu1 %v833_v11 }
  0x2c   :  { %657 = vmatpush3.bf16.msra.mxu0 %v764_v24 }
  0x2d   :  { %699 = vmatpush3.bf16.msra.mxu1 %v759_v22  ;;  %658 = vmatprep.subr.bf16.mxu0 %v766_v27 }
  0x2e   :  { %700 = vmatprep.subr.bf16.mxu1 %v833_v11 }
  0x30   :  { %659 = vmatpush3.bf16.msra.mxu0 %v767_v28 }
  0x31   :  { %701 = vmatpush3.bf16.msra.mxu1 %v762_v25  ;;  %660 = vmatprep.subr.bf16.mxu0 %v769_v30 }
  0x32   :  { %702 = vmatprep.subr.bf16.mxu1 %v833_v11 }
  0x34   :  { %661 = vmatpush3.bf16.msra.mxu0 %v770_v31 }
  0x35   :  { %703 = vmatpush3.bf16.msra.mxu1 %v765_v26  ;;  %714 = vmatprep.subr.bf16.mxu0 %v833_v11 }
  0x36   :  { %704 = vmatprep.subr.bf16.mxu1 %v833_v11 }
  0x39   :  { %705 = vmatpush3.bf16.msra.mxu1 %v768_v29 }
  0x3a   :  { %706 = vmatprep.subr.bf16.mxu1 %v833_v11 }
  0x3d   :  { %707 = vmatpush3.bf16.msra.mxu1 %v771_v32 }
  0x3e   :  { %708 = vmatprep.subr.bf16.mxu1 %v833_v11 }
  0x41   :  { %709 = vmatpush3.bf16.msra.mxu1 %v772_v33 }
  0xef   :  { %v139_v41 = vpop.f32.mrb[0].mxu1 }
  0xf0   :  { %v140_v42 = vadd.f32 %v139_v41, %v57_v39  ;;  %v141_v43 = vpop.f32.mrb[1].mxu1 }
  0xf1   :  { %v142_v45 = vadd.f32 %v141_v43, %v61_v40  ;;  %v143_v46 = vpop.f32.mrb[2].mxu1 }
  0xf2   :  { %v186_v47 = vmax.f32 %v140_v42, 0.0  ;;  %v144_v48 = vpop.f32.mrb[3].mxu1 }
  0xf3   :  { %v187_v49 = vmax.f32 %v142_v45, 0.0 }
  0xf4   :  { %v189_v53 = vpack.c.bf16 %v186_v47, %v186_v47 }
  0xf5   :  { %v190_v51 = vpack.c.bf16 %v187_v49, %v187_v49 }
  0xf7   :  { %v180_v54 = vpop.f32.mrb[4].mxu1  ;;  %423 = vmatprep.mubr.bf16.mxu0 %v190_v51 }
  0xf8   :  { %v181_v55 = vadd.f32 %v180_v54, %v65_v50  ;;  %v692_v56 = vpop.f32.mrb[5].mxu1  ;;  %424 = vmatmul.mubr.bf16.vlgmr.msra.gmra.mrb[0].mxu0 %v189_v53 }
  0xf9   :  { %v183_v57 = vpop.f32.mrb[6].mxu1  ;;  %715 = vmatpush3.bf16.msra.mxu0 %v773_v52  ;;  %730 = vmatprep.mubr.msk.bf16.mxu0 %vm834_vm1, %v833_v11 }
  0xfa   :  { %v188_v59 = vmax.f32 %v181_v55, 0.0  ;;  %v693_v60 = vpop.f32.mrb[7].mxu1  ;;  %716 = vmatprep.subr.bf16.mxu0 %v833_v11 }
  0xfc   :  { %v191_v61 = vpack.c.bf16 %v188_v59, %v188_v59 }
  0xfd   :  { %717 = vmatpush3.bf16.msra.mxu0 %v774_v58 }
  0xfe   :  { %711 = vmatmul.mubr.bf16.vlgmr.msra.gmra.mrb[8].mxu1 %v191_v61  ;;  %718 = vmatprep.subr.bf16.mxu0 %v833_v11 }
 0x101   :  { %719 = vmatpush3.bf16.msra.mxu0 %v775_v62 }
 0x102   :  { %720 = vmatprep.subr.bf16.mxu0 %v833_v11 }
 0x105   :  { %721 = vmatpush3.bf16.msra.mxu0 %v776_v63 }
 0x106   :  { %722 = vmatprep.subr.bf16.mxu0 %v833_v11 }
 0x109   :  { %723 = vmatpush3.bf16.msra.mxu0 %v777_v0 }
 0x10a   :  { %724 = vmatprep.subr.bf16.mxu0 %v833_v11 }
 0x10d   :  { %725 = vmatpush3.bf16.msra.mxu0 %v778_v1 }
 0x10e   :  { %726 = vmatprep.subr.bf16.mxu0 %v833_v11 }
 0x111   :  { %727 = vmatpush3.bf16.msra.mxu0 %v779_v2 }
 0x112   :  { %728 = vmatprep.subr.bf16.mxu0 %v833_v11 }
 0x115   :  { %729 = vmatpush3.bf16.msra.mxu0 %v780_v3 }
 0x1cb   :  { %v662_v4 = vpop.f32.mrb[0].mxu0 }
 0x1cc   :  { %v663_v5 = vpop.f32.mrb[1].mxu0 }
 0x1cd   :  { %v664_v7 = vadd.f32 %v663_v5, %v662_v4  ;;  %v665_v8 = vpop.f32.mrb[2].mxu0 }
 0x1ce   :  { %v666_v9 = vpop.f32.mrb[3].mxu0 }
 0x1cf   :  { %v426_v10 = vadd.f32 %v664_v7, %v609_v6 }
 0x1d1   :  { %v465_v12 = vpop.f32.mrb[8].mxu1 }
 0x1d2   :  { %v466_v13 = vadd.f32 %v465_v12, %v426_v10  ;;  %v712_v14 = vpop.f32.mrb[9].mxu1 }
 0x1d3   :  { %v468_v15 = vpop.f32.mrb[10].mxu1 }
 0x1d4   :  { %v471_v11 = vmax.f32 %v466_v13, 0.0  ;;  %v713_v16 = vpop.f32.mrb[11].mxu1 }
 0x1d6   :  { %v472_v17 = vpack.c.bf16 %v471_v11, %v471_v11 }
 0x1d8   :  { %731 = vmatmul.mubr.bf16.vlgmr.msra.gmra.mrb[4].mxu0 %v472_v17 }
 0x2ab   :  { %v578_v19 = vpop.f32.mrb[4].mxu0 }
 0x2ac   :  { %v579_v20 = vadd.f32 %v634_v18, %v578_v19  ;;  %v732_v21 = vpop.f32.mrb[5].mxu0 }
 0x2ad   :  { %v581_v22 = vpop.f32.mrb[6].mxu0 }
 0x2ae   :  { %v733_v23 = vpop.f32.mrb[7].mxu0  ;;  %585 = vst.msk [vmem:[#allocation5] sm:$0x3] %vm584_vm2, %v579_v20 }
 0x2af   :  { %814 = shalt.err (!%p811_p12)
}
 0x2b0   :  { %s815_s6 = scalar_lea.hbm %s987_s7, 32 }
 0x2b1   :  { %p816_p13 = scmp.ne.s32.totalorder %s987_s7, %s815_s6  ;;  %p819_p0 = scmp.lt.u32.totalorder %s815_s6, %s987_s7 }
 0x2b3   :  { %p821_p1 = pnand %p819_p0, %p816_p13 }
 0x2b5   :  { %824 = shalt.err (!%p821_p1)
}
 0x2b6   :  { %595 = dma.vmem_to_hbm [thread:$0]  %s593_s23, 32, %s987_s7, [#allocation4]  }
 0x2b7   :  { %827 = dma.done.wait [#allocation4], 32  }
 0x2b8   :  { %828 = vsyncadd [#allocation4], 4294967264 }
 0x2b9   :  { %599 = vsyncpa [#allocation3], 1 }
 0x2ba   :  { %600 = vsyncpa [#allocation4], 1 }

</bundles_post_ra>
